<compile_context>
chip_gen: v7x
topology: tpu7x:2x2x1
jax: 0.10.0
libtpu: 0.0.40
codegen_flags: <defaults>
</compile_context>

<pallas_src>
import jax
import jax.numpy as jnp
from jax.experimental import pallas as pl
from jax.experimental.pallas import tpu as pltpu

OUT_DIM = 5      # SFC output features
OUT_PAD = 128    # lane-dense padded output width


def rec_net_kernel(x_ref, xc_ref, w1t_ref, w2t_ref, b_ref,
                   sfc_wt_ref, sfc_b_ref, out_ref):
    # x_ref / xc_ref : (Bt, C, P)   batch tile, channels on sublanes, pixels on lanes
    # w1t_ref/w2t_ref: (C, C)       softmaxed 1x1-conv weights, transposed (in, out)
    # b_ref          : (1, C)       conv bias
    # sfc_wt_ref     : (C, 128)     SFC weight^T, zero-padded to 128 lanes
    # sfc_b_ref      : (1, 128)     SFC bias, zero-padded
    # out_ref        : (Bt, 128)    lane-dense output slab (cols 5..127 are junk/zero)
    inv_p = jnp.float32(1.0) / jnp.float32(x_ref.shape[-1])

    # --- global average pool first (linearity hoist; numerically exact) ---
    mx = jnp.sum(x_ref[...], axis=-1) * inv_p      # (Bt, C)
    mxc = jnp.sum(xc_ref[...], axis=-1) * inv_p    # (Bt, C)
    b = b_ref[...]                                 # (1, C)

    # --- reconstruct_layer on pooled rows: mean((Wx + b + x)/2) == (W mx + b + mx)/2 ---
    bdc1 = 0.5 * (jnp.dot(mx, w1t_ref[...],
                          preferred_element_type=jnp.float32) + b + mx)
    bdc2 = 0.5 * (jnp.dot(mxc, w2t_ref[...],
                          preferred_element_type=jnp.float32) + b + mxc)

    # --- per-sample L2 normalization (eps added after sqrt, matching PyTorch) ---
    n1 = jnp.sqrt(jnp.sum(bdc1 * bdc1, axis=-1, keepdims=True)) + 1e-6
    n2 = jnp.sqrt(jnp.sum(bdc2 * bdc2, axis=-1, keepdims=True)) + 1e-6
    # approx=False keeps exact 1/x; approx=True would move it to the EUP slot but
    # is kept exact here to stay within tight tolerance of the f32 reference.
    bdc_x = 0.5 * (bdc1 * pl.reciprocal(n1, approx=False)
                   + bdc2 * pl.reciprocal(n2, approx=False))
    # TODO(synk): Dropout / Dropout2d layers are identity in eval mode and are omitted.

    # --- SFC linear head, single lane-dense store ---
    out_ref[...] = (jnp.dot(bdc_x, sfc_wt_ref[...],
                            preferred_element_type=jnp.float32)
                    + sfc_b_ref[...])


def rec_net_forward(x_nchw, xc_nchw, params, *, batch_tile=None):
    N, C, H, W = x_nchw.shape
    P = H * W

    # NCHW -> (N, C, P) is a pure reshape: contiguous, no transpose, no extra HBM pass.
    x = x_nchw.reshape(N, C, P).astype(jnp.float32)
    xc = xc_nchw.reshape(N, C, P).astype(jnp.float32)
    # TODO(synk): on v6e/v7x the activations could be cast to bf16 to halve HBM bytes;
    # kept f32 to match PyTorch numerics exactly (and v5e has no bf16 VPU path).

    # Conv weight: F.softmax(weight) (implicit dim=1 for the 4-D conv weight), applied
    # in-place, so the second rec_layer call sees a doubly-softmaxed weight. Intentional.
    w_raw = params["conv_w"]                    # (C_out, C_in)
    w1 = jax.nn.softmax(w_raw, axis=1)
    w2 = jax.nn.softmax(w1, axis=1)
    w1t = jnp.transpose(w1)                     # (C_in, C_out): pooled_x @ W^T
    w2t = jnp.transpose(w2)
    b = params["conv_b"].reshape(1, C)

    # Pad the SFC head to 128 output lanes so the kernel store is lane-dense.
    sfc_wt = jnp.zeros((C, OUT_PAD), jnp.float32).at[:, :OUT_DIM].set(params["sfc_w"].T)
    sfc_b = jnp.zeros((1, OUT_PAD), jnp.float32).at[:, :OUT_DIM].set(params["sfc_b"])

    # Batch tiling: one grid step for small N; 256-sample (8-aligned) tiles otherwise
    # so the batch axis can shard across TensorCores (v7x) via "parallel" semantics.
    if batch_tile is None:
        batch_tile = N if N <= 256 else 256
    n_pad = pl.cdiv(N, batch_tile) * batch_tile
    if n_pad != N:
        pad = ((0, n_pad - N), (0, 0), (0, 0))
        x = jnp.pad(x, pad)
        xc = jnp.pad(xc, pad)
    grid = (n_pad // batch_tile,)

    cost = pl.CostEstimate(
        flops=(2 * n_pad * C * P             # two global-average-pool reductions
               + 4 * n_pad * C * C           # two (Bt,C)@(C,C) conv matmuls
               + 2 * n_pad * C * OUT_PAD),   # SFC head
        transcendentals=2 * n_pad,           # two sqrt per sample
        bytes_accessed=(2 * n_pad * C * P * 4   # x, xc reads (dominant)
                        + 2 * C * C * 4 + (C + 1) * OUT_PAD * 4 + C * 4
                        + n_pad * OUT_PAD * 4),
    )

    out = pl.pallas_call(
        rec_net_kernel,
        out_shape=jax.ShapeDtypeStruct((n_pad, OUT_PAD), jnp.float32),
        grid_spec=pltpu.PrefetchScalarGridSpec(
            num_scalar_prefetch=0,
            grid=grid,
            in_specs=[
                pl.BlockSpec((batch_tile, C, P), lambda i: (i, 0, 0)),   # x
                pl.BlockSpec((batch_tile, C, P), lambda i: (i, 0, 0)),   # x_cons
                pl.BlockSpec((C, C), lambda i: (0, 0)),                  # softmax(W)^T
                pl.BlockSpec((C, C), lambda i: (0, 0)),                  # softmax^2(W)^T
                pl.BlockSpec((1, C), lambda i: (0, 0)),                  # conv bias
                pl.BlockSpec((C, OUT_PAD), lambda i: (0, 0)),            # SFC W^T (padded)
                pl.BlockSpec((1, OUT_PAD), lambda i: (0, 0)),            # SFC bias (padded)
            ],
            out_specs=pl.BlockSpec((batch_tile, OUT_PAD), lambda i: (i, 0)),
        ),
        compiler_params=pltpu.CompilerParams(
            dimension_semantics=("parallel",)),
        cost_estimate=cost,
    )(x, xc, w1t, w2t, b, sfc_wt, sfc_b)

    return out[:N, :OUT_DIM]


def rec_net_reference(x_nchw, xc_nchw, params):
    """Pure-JAX reference implementation for verification."""
    w_raw = params["conv_w"]
    w1 = jax.nn.softmax(w_raw, axis=1)
    w2 = jax.nn.softmax(w1, axis=1)
    b = params["conv_b"]

    def rec_layer(x, w):
        # 1x1 conv over channels (NCHW) + skip-connect mean
        conv = jnp.einsum('oc,nchw->nohw', w, x) + b[None, :, None, None]
        return 0.5 * (conv + x)

    bdc1 = jnp.mean(rec_layer(x_nchw, w1), axis=(2, 3))
    bdc2 = jnp.mean(rec_layer(xc_nchw, w2), axis=(2, 3))
    n1 = jnp.linalg.norm(bdc1, axis=1, keepdims=True) + 1e-6
    n2 = jnp.linalg.norm(bdc2, axis=1, keepdims=True) + 1e-6
    bdc_x = 0.5 * (bdc1 / n1 + bdc2 / n2)
    return bdc_x @ params["sfc_w"].T + params["sfc_b"]


def init_params(key, reduce_dim):
    k1, k2, k3, k4 = jax.random.split(key, 4)
    bound_conv = 1.0 / (reduce_dim ** 0.5)
    bound_sfc = 1.0 / (reduce_dim ** 0.5)
    return {
        # Conv2d(C, C, kernel_size=1) weight squeezed to (C_out, C_in)
        "conv_w": jax.random.uniform(k1, (reduce_dim, reduce_dim),
                                     jnp.float32, -bound_conv, bound_conv),
        "conv_b": jax.random.uniform(k2, (reduce_dim,),
                                     jnp.float32, -bound_conv, bound_conv),
        # Linear(C, 5)
        "sfc_w": jax.random.uniform(k3, (OUT_DIM, reduce_dim),
                                    jnp.float32, -bound_sfc, bound_sfc),
        "sfc_b": jax.random.uniform(k4, (OUT_DIM,),
                                    jnp.float32, -bound_sfc, bound_sfc),
    }


if __name__ == "__main__":
    N, C, H, W = 2, 32, 8, 8          # small shapes; reduce_dim = C = 32
    key = jax.random.PRNGKey(0)
    kx, kxc, kp = jax.random.split(key, 3)

    sample_support = jax.random.normal(kx, (N, C, H, W), jnp.float32)
    sample_support_cons = jax.random.normal(kxc, (N, C, H, W), jnp.float32)
    params = init_params(kp, C)

    out = rec_net_forward(sample_support, sample_support_cons, params)
    out = jax.block_until_ready(out)

    ref = jax.block_until_ready(
        rec_net_reference(sample_support, sample_support_cons, params))

    assert out.shape == (N, OUT_DIM), out.shape
    if not jnp.allclose(out, ref, atol=1e-4, rtol=1e-4):
        raise AssertionError(f"mismatch: max abs err {jnp.max(jnp.abs(out - ref))}")

    print("KERNEL_OK")
</pallas_src>

<mosaic_0001>
module attributes {stable_mosaic.version = 11 : i64} {
  func.func @rec_net_kernel(%arg0: i32, %arg1: memref<2x32x64xf32, #tpu.memory_space<vmem>>, %arg2: memref<2x32x64xf32, #tpu.memory_space<vmem>>, %arg3: memref<32x32xf32, #tpu.memory_space<vmem>>, %arg4: memref<32x32xf32, #tpu.memory_space<vmem>>, %arg5: memref<1x32xf32, #tpu.memory_space<vmem>>, %arg6: memref<32x128xf32, #tpu.memory_space<vmem>>, %arg7: memref<1x128xf32, #tpu.memory_space<vmem>>, %arg8: memref<2x128xf32, #tpu.memory_space<vmem>>) attributes {dimension_semantics = [#tpu.dimension_semantics<parallel>], iteration_bounds = array<i64: 1>, scalar_prefetch = 0 : i64, scratch_operands = 0 : i64, tpu.core_type = #tpu.core_type<tc>, window_params = [{transform_indices = @transform_0, window_bounds = array<i64: 2, 32, 64>}, {transform_indices = @transform_1, window_bounds = array<i64: 2, 32, 64>}, {pipeline_mode = #tpu.pipeline_mode<synchronous>, transform_indices = @transform_2, window_bounds = array<i64: 32, 32>}, {pipeline_mode = #tpu.pipeline_mode<synchronous>, transform_indices = @transform_3, window_bounds = array<i64: 32, 32>}, {pipeline_mode = #tpu.pipeline_mode<synchronous>, transform_indices = @transform_4, window_bounds = array<i64: 1, 32>}, {pipeline_mode = #tpu.pipeline_mode<synchronous>, transform_indices = @transform_5, window_bounds = array<i64: 32, 128>}, {pipeline_mode = #tpu.pipeline_mode<synchronous>, transform_indices = @transform_6, window_bounds = array<i64: 1, 128>}, {transform_indices = @transform_7, window_bounds = array<i64: 2, 128>}]} {
    %cst = arith.constant 1.000000e+00 : f32
    %cst_0 = arith.constant 6.400000e+01 : f32
    %0 = arith.divf %cst, %cst_0 : f32
    %c0 = arith.constant 0 : index
    %c0_1 = arith.constant 0 : index
    %c0_2 = arith.constant 0 : index
    %1 = vector.load %arg1[%c0, %c0_1, %c0_2] : memref<2x32x64xf32, #tpu.memory_space<vmem>>, vector<2x32x64xf32>
    %cst_3 = arith.constant dense<0.000000e+00> : vector<2x32xf32>
    %2 = vector.multi_reduction <add>, %1, %cst_3 [2] : vector<2x32x64xf32> to vector<2x32xf32>
    %3 = vector.broadcast %0 : f32 to vector<2x32xf32>
    %4 = arith.mulf %2, %3 : vector<2x32xf32>
    %c0_4 = arith.constant 0 : index
    %c0_5 = arith.constant 0 : index
    %c0_6 = arith.constant 0 : index
    %5 = vector.load %arg2[%c0_4, %c0_5, %c0_6] : memref<2x32x64xf32, #tpu.memory_space<vmem>>, vector<2x32x64xf32>
    %cst_7 = arith.constant dense<0.000000e+00> : vector<2x32xf32>
    %6 = vector.multi_reduction <add>, %5, %cst_7 [2] : vector<2x32x64xf32> to vector<2x32xf32>
    %7 = vector.broadcast %0 : f32 to vector<2x32xf32>
    %8 = arith.mulf %6, %7 : vector<2x32xf32>
    %c0_8 = arith.constant 0 : index
    %c0_9 = arith.constant 0 : index
    %9 = vector.load %arg5[%c0_8, %c0_9] : memref<1x32xf32, #tpu.memory_space<vmem>>, vector<1x32xf32>
    %c0_10 = arith.constant 0 : index
    %c0_11 = arith.constant 0 : index
    %10 = vector.load %arg3[%c0_10, %c0_11] : memref<32x32xf32, #tpu.memory_space<vmem>>, vector<32x32xf32>
    %cst_12 = arith.constant dense<0.000000e+00> : vector<2x32xf32>
    %11 = tpu.matmul %4, %10, %cst_12 {dimension_numbers = #tpu.dot_dimension_numbers<[1], [0], [0], [1], [0, 0, 1, 1], [], []>} : vector<2x32xf32>, vector<32x32xf32>, vector<2x32xf32> -> vector<2x32xf32>
    %12 = vector.broadcast %9 : vector<1x32xf32> to vector<2x32xf32>
    %13 = arith.addf %11, %12 : vector<2x32xf32>
    %14 = arith.addf %13, %4 : vector<2x32xf32>
    %cst_13 = arith.constant 5.000000e-01 : f32
    %15 = vector.broadcast %cst_13 : f32 to vector<2x32xf32>
    %16 = arith.mulf %15, %14 : vector<2x32xf32>
    %c0_14 = arith.constant 0 : index
    %c0_15 = arith.constant 0 : index
    %17 = vector.load %arg4[%c0_14, %c0_15] : memref<32x32xf32, #tpu.memory_space<vmem>>, vector<32x32xf32>
    %cst_16 = arith.constant dense<0.000000e+00> : vector<2x32xf32>
    %18 = tpu.matmul %8, %17, %cst_16 {dimension_numbers = #tpu.dot_dimension_numbers<[1], [0], [0], [1], [0, 0, 1, 1], [], []>} : vector<2x32xf32>, vector<32x32xf32>, vector<2x32xf32> -> vector<2x32xf32>
    %19 = vector.broadcast %9 : vector<1x32xf32> to vector<2x32xf32>
    %20 = arith.addf %18, %19 : vector<2x32xf32>
    %21 = arith.addf %20, %8 : vector<2x32xf32>
    %cst_17 = arith.constant 5.000000e-01 : f32
    %22 = vector.broadcast %cst_17 : f32 to vector<2x32xf32>
    %23 = arith.mulf %22, %21 : vector<2x32xf32>
    %24 = arith.mulf %16, %16 : vector<2x32xf32>
    %cst_18 = arith.constant dense<0.000000e+00> : vector<2xf32>
    %25 = vector.multi_reduction <add>, %24, %cst_18 [1] : vector<2x32xf32> to vector<2xf32>
    %26 = vector.shape_cast %25 : vector<2xf32> to vector<2x1xf32>
    %27 = math.sqrt %26 : vector<2x1xf32>
    %cst_19 = arith.constant 9.99999997E-7 : f32
    %28 = vector.broadcast %cst_19 : f32 to vector<2x1xf32>
    %29 = arith.addf %27, %28 : vector<2x1xf32>
    %30 = arith.mulf %23, %23 : vector<2x32xf32>
    %cst_20 = arith.constant dense<0.000000e+00> : vector<2xf32>
    %31 = vector.multi_reduction <add>, %30, %cst_20 [1] : vector<2x32xf32> to vector<2xf32>
    %32 = vector.shape_cast %31 : vector<2xf32> to vector<2x1xf32>
    %33 = math.sqrt %32 : vector<2x1xf32>
    %cst_21 = arith.constant 9.99999997E-7 : f32
    %34 = vector.broadcast %cst_21 : f32 to vector<2x1xf32>
    %35 = arith.addf %33, %34 : vector<2x1xf32>
    %36 = tpu.reciprocal %29 : vector<2x1xf32> -> vector<2x1xf32>
    %37 = vector.broadcast %36 : vector<2x1xf32> to vector<2x32xf32>
    %38 = arith.mulf %16, %37 : vector<2x32xf32>
    %39 = tpu.reciprocal %35 : vector<2x1xf32> -> vector<2x1xf32>
    %40 = vector.broadcast %39 : vector<2x1xf32> to vector<2x32xf32>
    %41 = arith.mulf %23, %40 : vector<2x32xf32>
    %42 = arith.addf %38, %41 : vector<2x32xf32>
    %cst_22 = arith.constant 5.000000e-01 : f32
    %43 = vector.broadcast %cst_22 : f32 to vector<2x32xf32>
    %44 = arith.mulf %43, %42 : vector<2x32xf32>
    %c0_23 = arith.constant 0 : index
    %c0_24 = arith.constant 0 : index
    %45 = vector.load %arg6[%c0_23, %c0_24] : memref<32x128xf32, #tpu.memory_space<vmem>>, vector<32x128xf32>
    %cst_25 = arith.constant dense<0.000000e+00> : vector<2x128xf32>
    %46 = tpu.matmul %44, %45, %cst_25 {dimension_numbers = #tpu.dot_dimension_numbers<[1], [0], [0], [1], [0, 0, 1, 1], [], []>} : vector<2x32xf32>, vector<32x128xf32>, vector<2x128xf32> -> vector<2x128xf32>
    %c0_26 = arith.constant 0 : index
    %c0_27 = arith.constant 0 : index
    %47 = vector.load %arg7[%c0_26, %c0_27] : memref<1x128xf32, #tpu.memory_space<vmem>>, vector<1x128xf32>
    %48 = vector.broadcast %47 : vector<1x128xf32> to vector<2x128xf32>
    %49 = arith.addf %46, %48 : vector<2x128xf32>
    %c0_28 = arith.constant 0 : index
    %c0_29 = arith.constant 0 : index
    %50 = vector.load %arg8[%c0_28, %c0_29] : memref<2x128xf32, #tpu.memory_space<vmem>>, vector<2x128xf32>
    tpu.vector_store %arg8[%c0_28, %c0_29], %49 {strides = array<i32>} : memref<2x128xf32, #tpu.memory_space<vmem>>, vector<2x128xf32>,
    return
  }
  func.func @transform_0(%arg0: i32) -> (i32, i32, i32) {
    %c0_i32 = arith.constant 0 : i32
    %c0_i32_0 = arith.constant 0 : i32
    %c0_i32_1 = arith.constant 0 : i32
    return %arg0, %c0_i32, %c0_i32_0 : i32, i32, i32
  }
  func.func @transform_1(%arg0: i32) -> (i32, i32, i32) {
    %c0_i32 = arith.constant 0 : i32
    %c0_i32_0 = arith.constant 0 : i32
    %c0_i32_1 = arith.constant 0 : i32
    return %arg0, %c0_i32, %c0_i32_0 : i32, i32, i32
  }
  func.func @transform_2(%arg0: i32) -> (i32, i32) {
    %c0_i32 = arith.constant 0 : i32
    %c0_i32_0 = arith.constant 0 : i32
    %c0_i32_1 = arith.constant 0 : i32
    return %c0_i32, %c0_i32_0 : i32, i32
  }
  func.func @transform_3(%arg0: i32) -> (i32, i32) {
    %c0_i32 = arith.constant 0 : i32
    %c0_i32_0 = arith.constant 0 : i32
    %c0_i32_1 = arith.constant 0 : i32
    return %c0_i32, %c0_i32_0 : i32, i32
  }
  func.func @transform_4(%arg0: i32) -> (i32, i32) {
    %c0_i32 = arith.constant 0 : i32
    %c0_i32_0 = arith.constant 0 : i32
    %c0_i32_1 = arith.constant 0 : i32
    return %c0_i32, %c0_i32_0 : i32, i32
  }
  func.func @transform_5(%arg0: i32) -> (i32, i32) {
    %c0_i32 = arith.constant 0 : i32
    %c0_i32_0 = arith.constant 0 : i32
    %c0_i32_1 = arith.constant 0 : i32
    return %c0_i32, %c0_i32_0 : i32, i32
  }
  func.func @transform_6(%arg0: i32) -> (i32, i32) {
    %c0_i32 = arith.constant 0 : i32
    %c0_i32_0 = arith.constant 0 : i32
    %c0_i32_1 = arith.constant 0 : i32
    return %c0_i32, %c0_i32_0 : i32, i32
  }
  func.func @transform_7(%arg0: i32) -> (i32, i32) {
    %c0_i32 = arith.constant 0 : i32
    %c0_i32_0 = arith.constant 0 : i32
    return %arg0, %c0_i32 : i32, i32
  }
}

</mosaic_0001>

<bundles_post_ra>
// kernel: tpu_custom_call.1
= control target key start
LH: loop header
LB: loop body
LE: loop exit
PB: predicated region body
PF: predicated region fallthrough
CT: control target
= control target key end

     0   :  { %12 = vsyncpa [#allocation3], 0  ;;  %s1011_s0 = inlined_call_operand.hbm [shape: f32[2,32,64], index: 0, kind: input, shape index: {}]   ;;  %s1012_s1 = inlined_call_operand.hbm [shape: f32[2,32,64], index: 1, kind: input, shape index: {}]   ;;  %s1013_s2 = inlined_call_operand.hbm [shape: f32[32,32], index: 2, kind: input, shape index: {}]   ;;  %s1014_s3 = inlined_call_operand.hbm [shape: f32[32,32], index: 3, kind: input, shape index: {}]   ;;  %s1015_s4 = inlined_call_operand.vmem [shape: f32[1,32], index: 4, kind: input, shape index: {}]   ;;  %s1016_s5 = inlined_call_operand.hbm [shape: f32[32,128], index: 5, kind: input, shape index: {}]   ;;  %s1017_s6 = inlined_call_operand.vmem [shape: f32[1,128], index: 6, kind: input, shape index: {}]   ;;  %s1018_s7 = inlined_call_operand.hbm [shape: f32[2,128], index: 7, kind: output, shape index: {}]  }
   0x1   :  { %13 = vsyncpa [#allocation6], 0 }
   0x2   :  { %14 = vsyncpa [#allocation9], 0 }
   0x3   :  { %15 = vsyncpa [#allocation4], 0  ;;  %s808_s24 = smov [#allocation5]   ;;  %s809_s26 = smov [#allocation8]  }
   0x4   :  { %s33_s25 = sshll.u32 %s808_s24, 4  ;;  %s57_s27 = sshll.u32 %s809_s26, 4  ;;  %s34_s25 = int_to_ptr.vmem [resolvable:$true] %s33_s25  ;;  %s859_s27 = int_to_ptr.vmem [resolvable:$true] %s57_s27 }
   0x5   :  { %s668_s30 = scalar_lea.hbm %s1012_s1, 1024 }
   0x6   :  { %p669_p0 = scmp.ne.s32.totalorder %s1012_s1, %s668_s30  ;;  %p672_p1 = scmp.lt.u32.totalorder %s668_s30, %s1012_s1 }
   0x8   :  { %p674_p2 = pnand %p672_p1, %p669_p0 }
   0xa   :  { %677 = shalt.err (!%p674_p2)
}
   0xb   :  { %s678_s12 = scalar_lea.vmem %s34_s25, 1024  ;;  %p683_p4 = scmp.lt.s32.totalorder %s34_s25, %s34_s25 }
   0xc   :  { %p679_p3 = scmp.ne.s32.totalorder %s34_s25, %s678_s12  ;;  %p684_p5 = scmp.lt.s32.totalorder %s678_s12, %s678_s12 }
   0xe   :  { %p685_p6 = por %p684_p5, %p683_p4 }
  0x10   :  { %p686_p7 = pnand %p685_p6, %p679_p3 }
  0x12   :  { %689 = shalt.err (!%p686_p7)
}
  0x13   :  { %s810_s13 = smov 128   ;;  %s811_s14 = smov 8  }
  0x14   :  { %39 = dma.hbm_to_vmem [thread:$0]  %s1012_s1, 1024, %s34_s25, [#allocation6], %s810_s13, %s810_s13, %s811_s14  }
  0x15   :  { %s690_s19 = scalar_lea.hbm %s1014_s3, 512 }
  0x16   :  { %p691_p8 = scmp.ne.s32.totalorder %s1014_s3, %s690_s19  ;;  %p694_p9 = scmp.lt.u32.totalorder %s690_s19, %s1014_s3 }
  0x18   :  { %p696_p10 = pnand %p694_p9, %p691_p8 }
  0x1a   :  { %699 = shalt.err (!%p696_p10)
}
  0x1b   :  { %s700_s24 = scalar_lea.vmem %s859_s27, 512  ;;  %p705_p12 = scmp.lt.s32.totalorder %s859_s27, %s859_s27 }
  0x1c   :  { %p701_p11 = scmp.ne.s32.totalorder %s859_s27, %s700_s24  ;;  %p706_p13 = scmp.lt.s32.totalorder %s700_s24, %s700_s24 }
  0x1e   :  { %p707_p0 = por %p706_p13, %p705_p12 }
  0x20   :  { %p708_p1 = pnand %p707_p0, %p701_p11 }
  0x22   :  { %711 = shalt.err (!%p708_p1)
}
  0x23   :  { %63 = dma.hbm_to_vmem [thread:$0]  %s1014_s3, 512, %s859_s27, [#allocation9], %s810_s13, %s810_s13, %s811_s14  }
  0x24   :  { %s812_s26 = smov [#allocation2]   ;;  %s813_s29 = smov [#allocation7]  }
  0x25   :  { %s21_s28 = sshll.u32 %s812_s26, 4  ;;  %s45_s30 = sshll.u32 %s813_s29, 4  ;;  %s22_s28 = int_to_ptr.vmem [resolvable:$true] %s21_s28  ;;  %s896_s30 = int_to_ptr.vmem [resolvable:$true] %s45_s30 }
  0x26   :  { %s712_s10 = scalar_lea.hbm %s1011_s0, 1024 }
  0x27   :  { %p713_p2 = scmp.ne.s32.totalorder %s1011_s0, %s712_s10  ;;  %p716_p3 = scmp.lt.u32.totalorder %s712_s10, %s1011_s0 }
  0x29   :  { %p718_p4 = pnand %p716_p3, %p713_p2 }
  0x2b   :  { %721 = shalt.err (!%p718_p4)
}
  0x2c   :  { %s722_s3 = scalar_lea.vmem %s22_s28, 1024  ;;  %p727_p6 = scmp.lt.s32.totalorder %s22_s28, %s22_s28 }
  0x2d   :  { %p723_p5 = scmp.ne.s32.totalorder %s22_s28, %s722_s3  ;;  %p728_p7 = scmp.lt.s32.totalorder %s722_s3, %s722_s3 }
  0x2f   :  { %p729_p8 = por %p728_p7, %p727_p6 }
  0x31   :  { %p730_p9 = pnand %p729_p8, %p723_p5 }
  0x33   :  { %733 = shalt.err (!%p730_p9)
}
  0x34   :  { %27 = dma.hbm_to_vmem [thread:$0]  %s1011_s0, 1024, %s22_s28, [#allocation3], %s810_s13, %s810_s13, %s811_s14  }
  0x35   :  { %s734_s20 = scalar_lea.hbm %s1013_s2, 512 }
  0x36   :  { %p735_p10 = scmp.ne.s32.totalorder %s1013_s2, %s734_s20  ;;  %p738_p11 = scmp.lt.u32.totalorder %s734_s20, %s1013_s2 }
  0x38   :  { %p740_p12 = pnand %p738_p11, %p735_p10 }
  0x3a   :  { %743 = shalt.err (!%p740_p12)
}
  0x3b   :  { %s744_s1 = scalar_lea.vmem %s896_s30, 512  ;;  %p749_p0 = scmp.lt.s32.totalorder %s896_s30, %s896_s30 }
  0x3c   :  { %p745_p13 = scmp.ne.s32.totalorder %s896_s30, %s744_s1  ;;  %p750_p1 = scmp.lt.s32.totalorder %s744_s1, %s744_s1 }
  0x3e   :  { %p751_p2 = por %p750_p1, %p749_p0 }
  0x40   :  { %p752_p3 = pnand %p751_p2, %p745_p13 }
  0x42   :  { %755 = shalt.err (!%p752_p3)
}
  0x43   :  { %51 = dma.hbm_to_vmem [thread:$0]  %s1013_s2, 512, %s896_s30, [#allocation6], %s810_s13, %s810_s13, %s811_s14  }
  0x44   :  { %s814_s26 = smov [#allocation10]   ;;  %s756_s9 = scalar_lea.hbm %s1016_s5, 512 }
  0x45   :  { %s71_s28 = sshll.u32 %s814_s26, 4  ;;  %p757_p4 = scmp.ne.s32.totalorder %s1016_s5, %s756_s9  ;;  %s72_s28 = int_to_ptr.vmem [resolvable:$true] %s71_s28 }
  0x46   :  { %p760_p5 = scmp.lt.u32.totalorder %s756_s9, %s1016_s5 }
  0x48   :  { %p762_p6 = pnand %p760_p5, %p757_p4 }
  0x4a   :  { %765 = shalt.err (!%p762_p6)
}
  0x4b   :  { %s766_s16 = scalar_lea.vmem %s72_s28, 512  ;;  %p771_p8 = scmp.lt.s32.totalorder %s72_s28, %s72_s28 }
  0x4c   :  { %p767_p7 = scmp.ne.s32.totalorder %s72_s28, %s766_s16  ;;  %p772_p9 = scmp.lt.s32.totalorder %s766_s16, %s766_s16 }
  0x4e   :  { %p773_p10 = por %p772_p9, %p771_p8 }
  0x50   :  { %p774_p11 = pnand %p773_p10, %p767_p7 }
  0x52   :  { %777 = shalt.err (!%p774_p11)
}
  0x53   :  { %77 = dma.hbm_to_vmem [thread:$0]  %s1016_s5, 512, %s72_s28, [#allocation9], %s810_s13, %s810_s13, %s811_s14  }
  0x54   :  { %800 = dma.done.wait [#allocation3], 1024  }
  0x55   :  { %801 = vsyncadd [#allocation3], 4294966272 }
  0x56   :  { %802 = dma.done.wait [#allocation6], 1536  }
  0x57   :  { %803 = vsyncadd [#allocation6], 4294965760 }
  0x58   :  { %804 = dma.done.wait [#allocation9], 1024  }
  0x59   :  { %805 = vsyncadd [#allocation9], 4294966272  ;;  %vm103_vm0 = vcmask 523264   ;;  %v99_v0 = vld [vmem:[#allocation2 + $0x20] sm:$0xff]  ;;  %v100_v2 = vld [vmem:[#allocation2 + $0x28] sm:$0xff]  ;;  %v815_v35 = vmov 0.0|0.0   ;;  %v195_v50 = vlaneseq }
  0x5a   :  { %v95_v1 = vld [vmem:[#allocation2] sm:$0xff]  ;;  %v116_v3 = vsel %vm103_vm0, %v99_v0, 0.0  ;;  %v96_v5 = vld [vmem:[#allocation2 + $0x8] sm:$0xff]  ;;  %v119_v6 = vsel %vm103_vm0, %v100_v2, 0.0  ;;  %v101_v16 = vld [vmem:[#allocation2 + $0x30] sm:$0xff]  ;;  %631 = vmatprep.subr.bf16.mxu0 %v815_v35  ;;  %637 = vmatprep.subr.bf16.mxu1 %v815_v35  ;;  %vm816_vm1 = vmmov 0  }
  0x5b   :  { %v104_v4 = vsel %vm103_vm0, %v95_v1, 0.0  ;;  %117 = vadd.xlane.f32.xlu1 %v116_v3  ;;  %v107_v7 = vsel %vm103_vm0, %v96_v5, 0.0  ;;  %v137_v8 = vld [vmem:[#allocation5 + $0x8] sm:$0xff]  ;;  %v136_v9 = vld [vmem:[#allocation5] sm:$0xff]  ;;  %v97_v17 = vld [vmem:[#allocation2 + $0x10] sm:$0xff]  ;;  %v122_v18 = vsel %vm103_vm0, %v101_v16, 0.0 }
  0x5c   :  { %105 = vadd.xlane.f32.xlu0 %v104_v4  ;;  %v147_v10 = vsel %vm103_vm0, %v137_v8, 0.0  ;;  %v144_v11 = vsel %vm103_vm0, %v136_v9, 0.0  ;;  %v141_v12 = vld [vmem:[#allocation5 + $0x28] sm:$0xff]  ;;  %v140_v13 = vld [vmem:[#allocation5 + $0x20] sm:$0xff]  ;;  %v110_v19 = vsel %vm103_vm0, %v97_v17, 0.0  ;;  %v142_v20 = vld [vmem:[#allocation5 + $0x30] sm:$0xff] }
  0x5d   :  { %v159_v14 = vsel %vm103_vm0, %v141_v12, 0.0  ;;  %v156_v15 = vsel %vm103_vm0, %v140_v13, 0.0  ;;  %v138_v21 = vld [vmem:[#allocation5 + $0x10] sm:$0xff]  ;;  %v162_v22 = vsel %vm103_vm0, %v142_v20, 0.0  ;;  %v102_v24 = vld [vmem:[#allocation2 + $0x38] sm:$0xff]  ;;  %v177_v32 = vld [vmem:[#allocation7] sm:$0xff] }
  0x5e   :  { %v150_v23 = vsel %vm103_vm0, %v138_v21, 0.0  ;;  %v98_v25 = vld [vmem:[#allocation2 + $0x18] sm:$0xff]  ;;  %v125_v26 = vsel %vm103_vm0, %v102_v24, 0.0  ;;  %v178_v33 = vld [vmem:[#allocation7 + $0x8] sm:$0xff]  ;;  %v179_v36 = vld [vmem:[#allocation7 + $0x10] sm:$0xff]  ;;  %v817_v44 = vmov 0.0  }
  0x5f   :  { %120 = vadd.xlane.f32.xlu1 %v119_v6  ;;  %v113_v27 = vsel %vm103_vm0, %v98_v25, 0.0  ;;  %v143_v28 = vld [vmem:[#allocation5 + $0x38] sm:$0xff]  ;;  %v632_v34 = vpack.c.bf16 %v178_v33, %v177_v32  ;;  %v319_v38 = vld [vmem:[#allocation8] sm:$0xff]  ;;  %v320_v40 = vld [vmem:[#allocation8 + $0x8] sm:$0xff]  ;;  %606 = vmatprep.mubr.msk.f32.mxu0 %vm816_vm1, %v817_v44  ;;  %v196_v53 = vand.u32 127, %v195_v50  ;;  %v198_v57 = vshrl.u32 %v195_v50, 7 }
  0x60   :  { %108 = vadd.xlane.f32.xlu0 %v107_v7  ;;  %v139_v29 = vld [vmem:[#allocation5 + $0x18] sm:$0xff]  ;;  %v165_v30 = vsel %vm103_vm0, %v143_v28, 0.0  ;;  %v638_v41 = vpack.c.bf16 %v320_v40, %v319_v38  ;;  %v321_v42 = vld [vmem:[#allocation8 + $0x10] sm:$0xff]  ;;  %617 = vmatprep.mubr.msk.f32.mxu1 %vm816_vm1, %v817_v44  ;;  %vm206_vm2 = vcmask 130112   ;;  %vm213_vm3 = vcmask 195712   ;;  %s818_s3 = smov [#allocation11]  }
  0x61   :  { %v153_v31 = vsel %vm103_vm0, %v139_v29, 0.0  ;;  %633 = vmatpush3.bf16.msra.mxu0 %v632_v34  ;;  %v180_v37 = vld [vmem:[#allocation7 + $0x18] sm:$0xff]  ;;  %v201_v56 = vadd.s32 4294967288, %v196_v53  ;;  %v208_v58 = vadd.s32 4294967280, %v196_v53  ;;  %v215_v61 = vadd.s32 4294967272, %v196_v53  ;;  %s567_s27 = sshll.u32 %s818_s3, 4  ;;  %s568_s27 = int_to_ptr.vmem [resolvable:$true] %s567_s27 }
  0x62   :  { %634 = vmatprep.subr.bf16.mxu0 %v815_v35  ;;  %v635_v39 = vpack.c.bf16 %v180_v37, %v179_v36  ;;  %639 = vmatpush3.bf16.msra.mxu1 %v638_v41  ;;  %v322_v43 = vld [vmem:[#allocation8 + $0x18] sm:$0xff]  ;;  %v199_v1 = vsub.s32 %v196_v53, %v198_v57  ;;  %vm220_vm4 = vcmask 261312   ;;  %vm241_vm5 = vcmask 1041409   ;;  %s778_s17 = scalar_lea.vmem %s568_s27, 32  ;;  %p783_p13 = scmp.lt.s32.totalorder %s568_s27, %s568_s27 }
  0x63   :  { %148 = vadd.xlane.f32.xlu1 %v147_v10  ;;  %640 = vmatprep.subr.bf16.mxu1 %v815_v35  ;;  %v641_v45 = vpack.c.bf16 %v322_v43, %v321_v42  ;;  %v204_v62 = vsub.s32 %v201_v56, %v198_v57  ;;  %v211_v4 = vsub.s32 %v208_v58, %v198_v57  ;;  %vm243_vm6 = vcmask 261120   ;;  %v578_v56 = vld [vmem:[%s1015_s4] ss:$0 sm:$0xff]  ;;  %p779_p12 = scmp.ne.s32.totalorder %s568_s27, %s778_s17  ;;  %p784_p0 = scmp.lt.s32.totalorder %s778_s17, %s778_s17 }
  0x64   :  { %145 = vadd.xlane.f32.xlu0 %v144_v11  ;;  %v218_v9 = vsub.s32 %v215_v61, %v198_v57  ;;  %vm446_vm7 = vcmask 254976  }
  0x65   :  { %636 = vmatpush3.bf16.msra.mxu0 %v635_v39  ;;  %p785_p1 = por %p784_p0, %p783_p13 }
  0x66   :  { %643 = vmatprep.subr.bf16.mxu0 %v815_v35  ;;  %642 = vmatpush3.bf16.msra.mxu1 %v641_v45 }
  0x67   :  { %160 = vadd.xlane.f32.xlu1 %v159_v14  ;;  %p786_p2 = pnand %p785_p1, %p779_p12 }
  0x68   :  { %157 = vadd.xlane.f32.xlu0 %v156_v15 }
  0x6b   :  { %123 = vadd.xlane.f32.xlu1 %v122_v18 }
  0x6c   :  { %111 = vadd.xlane.f32.xlu0 %v110_v19 }
  0x6f   :  { %163 = vadd.xlane.f32.xlu1 %v162_v22 }
  0x70   :  { %151 = vadd.xlane.f32.xlu0 %v150_v23 }
  0x73   :  { %126 = vadd.xlane.f32.xlu1 %v125_v26 }
  0x74   :  { %114 = vadd.xlane.f32.xlu0 %v113_v27 }
  0x77   :  { %166 = vadd.xlane.f32.xlu1 %v165_v30 }
  0x78   :  { %154 = vadd.xlane.f32.xlu0 %v153_v31 }
  0xe8   :  { %v118_v46 = vpop.xlane.xlu1 %117 }
  0xe9   :  { %v106_v47 = vpop.xlane.xlu0 %105  ;;  %v132_v2 = vmul.f32 0.015625, %v118_v46 }
  0xea   :  { %v128_v3 = vmul.f32 0.015625, %v106_v47 }
  0xeb   :  { %v225_v14 = vrot.slane %v132_v2, %v199_v1 }
  0xec   :  { %v121_v48 = vpop.xlane.xlu1 %120  ;;  %v200_v15 = vrot.slane %v128_v3, %v199_v1 }
  0xed   :  { %v109_v49 = vpop.xlane.xlu0 %108  ;;  %v133_v63 = vmul.f32 0.015625, %v121_v48 }
  0xee   :  { %v129_v0 = vmul.f32 0.015625, %v109_v49 }
  0xef   :  { %v229_v10 = vrot.slane %v133_v63, %v204_v62 }
  0xf0   :  { %v149_v51 = vpop.xlane.xlu1 %148  ;;  %v205_v11 = vrot.slane %v129_v0, %v204_v62 }
  0xf1   :  { %v146_v52 = vpop.xlane.xlu0 %145  ;;  %v169_v12 = vmul.f32 0.015625, %v149_v51  ;;  %v230_v26 = vsel %vm206_vm2, %v229_v10, %v225_v14  ;;  %v479_v10 = vld [vmem:[#allocation10 + $0x18] sm:$0xff] }
  0xf2   :  { %v168_v13 = vmul.f32 0.015625, %v146_v52  ;;  %v207_v27 = vsel %vm206_vm2, %v205_v11, %v200_v15 }
  0xf3   :  { %v338_v28 = vrot.slane %v169_v12, %v204_v62 }
  0xf4   :  { %v161_v54 = vpop.xlane.xlu1 %160  ;;  %v334_v29 = vrot.slane %v168_v13, %v199_v1 }
  0xf5   :  { %v158_v55 = vpop.xlane.xlu0 %157  ;;  %v173_v16 = vmul.f32 0.015625, %v161_v54 }
  0xf6   :  { %v172_v17 = vmul.f32 0.015625, %v158_v55  ;;  %v339_v47 = vsel %vm206_vm2, %v338_v28, %v334_v29 }
  0xf7   :  { %v357_v30 = vrot.slane %v173_v16, %v204_v62 }
  0xf8   :  { %v124_v59 = vpop.xlane.xlu1 %123  ;;  %v353_v31 = vrot.slane %v172_v17, %v199_v1 }
  0xf9   :  { %v112_v60 = vpop.xlane.xlu0 %111  ;;  %v134_v5 = vmul.f32 0.015625, %v124_v59 }
  0xfa   :  { %v130_v6 = vmul.f32 0.015625, %v112_v60  ;;  %v358_v48 = vsel %vm206_vm2, %v357_v30, %v353_v31  ;;  %v581_v31 = vld [vmem:[%s1017_s6] ss:$0 sm:$0xff] }
  0xfb   :  { %v234_v18 = vrot.slane %v134_v5, %v211_v4 }
  0xfc   :  { %v164_v7 = vpop.xlane.xlu1 %163  ;;  %v212_v19 = vrot.slane %v130_v6, %v211_v4  ;;  %v476_v6 = vld [vmem:[#allocation10] sm:$0xff] }
  0xfd   :  { %v152_v8 = vpop.xlane.xlu0 %151  ;;  %v174_v20 = vmul.f32 0.015625, %v164_v7  ;;  %v235_v34 = vsel %vm213_vm3, %v234_v18, %v230_v26  ;;  %v477_v7 = vld [vmem:[#allocation10 + $0x8] sm:$0xff] }
  0xfe   :  { %v170_v21 = vmul.f32 0.015625, %v152_v8  ;;  %v214_v36 = vsel %vm213_vm3, %v212_v19, %v207_v27  ;;  %v478_v8 = vld [vmem:[#allocation10 + $0x10] sm:$0xff] }
  0xff   :  { %v362_v37 = vrot.slane %v174_v20, %v211_v4  ;;  %v647_v11 = vpack.c.bf16 %v479_v10, %v478_v8 }
 0x100   :  { %v127_v22 = vpop.xlane.xlu1 %126  ;;  %v343_v38 = vrot.slane %v170_v21, %v211_v4 }
 0x101   :  { %v115_v23 = vpop.xlane.xlu0 %114  ;;  %v135_v24 = vmul.f32 0.015625, %v127_v22  ;;  %v363_v51 = vsel %vm213_vm3, %v362_v37, %v358_v48 }
 0x102   :  { %v131_v25 = vmul.f32 0.015625, %v115_v23  ;;  %v344_v52 = vsel %vm213_vm3, %v343_v38, %v339_v47 }
 0x103   :  { %v239_v32 = vrot.slane %v135_v24, %v218_v9 }
 0x104   :  { %v219_v33 = vrot.slane %v131_v25, %v218_v9  ;;  %v167_v39 = vpop.xlane.xlu1 %166 }
 0x105   :  { %v155_v40 = vpop.xlane.xlu0 %154  ;;  %v175_v41 = vmul.f32 0.015625, %v167_v39  ;;  %v240_v45 = vsel %vm220_vm4, %v239_v32, %v235_v34 }
 0x106   :  { %v171_v42 = vmul.f32 0.015625, %v155_v40  ;;  %v221_v43 = vsel %vm220_vm4, %v219_v33, %v214_v36 }
 0x107   :  { %v242_v46 = vsel %vm241_vm5, %v240_v45, %v221_v43  ;;  %v367_v49 = vrot.slane %v175_v41, %v218_v9 }
 0x108   :  { %v348_v50 = vrot.slane %v171_v42, %v218_v9  ;;  %607 = vmatmul.mubr.msk.f32.vlgmr.msra.gmra.mrb[0].mxu0 %vm243_vm6, %v242_v46  ;;  %v644_v9 = vpack.c.bf16 %v477_v7, %v476_v6 }
 0x109   :  { %628 = vmatprep.mubr.msk.f32.mxu0 %vm816_vm1, %v817_v44  ;;  %v368_v54 = vsel %vm220_vm4, %v367_v49, %v363_v51 }
 0x10a   :  { %v349_v53 = vsel %vm220_vm4, %v348_v50, %v344_v52  ;;  %645 = vmatpush3.bf16.msra.mxu0 %v644_v9 }
 0x10b   :  { %v369_v55 = vsel %vm241_vm5, %v368_v54, %v349_v53  ;;  %646 = vmatprep.subr.bf16.mxu0 %v815_v35 }
 0x10c   :  { %618 = vmatmul.mubr.msk.f32.vlgmr.msra.gmra.mrb[0].mxu1 %vm243_vm6, %v369_v55 }
 0x10e   :  { %648 = vmatpush3.bf16.msra.mxu0 %v647_v11 }
 0x1db   :  { %v312_v57 = vpop.f32.mrb[0].mxu0 }
 0x1dc   :  { %v313_v58 = vadd.f32 %v578_v56, %v312_v57  ;;  %v608_v59 = vpop.f32.mrb[1].mxu0 }
 0x1de   :  { %v317_v60 = vadd.f32 %v313_v58, %v242_v46 }
 0x1df   :  { %v438_v61 = vpop.f32.mrb[0].mxu1 }
 0x1e0   :  { %v318_v62 = vmul.f32 0.5, %v317_v60  ;;  %v439_v63 = vadd.f32 %v578_v56, %v438_v61  ;;  %v619_v44 = vpop.f32.mrb[1].mxu1 }
 0x1e2   :  { %v443_v0 = vadd.f32 %v439_v63, %v369_v55  ;;  %v445_v1 = vmul.f32 %v318_v62, %v318_v62 }
 0x1e4   :  { %v444_v2 = vmul.f32 0.5, %v443_v0  ;;  %v447_v3 = vsel %vm446_vm7, %v445_v1, 0.0 }
 0x1e5   :  { %448 = vadd.xlane.f32.xlu0 %v447_v3 }
 0x1e6   :  { %v458_v4 = vmul.f32 %v444_v2, %v444_v2 }
 0x1e8   :  { %v459_v5 = vsel %vm446_vm7, %v458_v4, 0.0 }
 0x1e9   :  { %460 = vadd.xlane.f32.xlu1 %v459_v5 }
 0x272   :  { %v449_v12 = vpop.xlane.xlu0 %448 }
 0x273   :  { %660 = vrsqrt.f32 %v449_v12  ;;  %vm452_vm8 = vcmp.eq.f32.partialorder %v449_v12, inf  ;;  %v455_v16 = vand.u32 2147483648, %v449_v12  ;;  %vm454_vm9 = vcmp.eq.f32.partialorder %v449_v12, 0.0 }
 0x276   :  { %v461_v13 = vpop.xlane.xlu1 %460 }
 0x277   :  { %662 = vrsqrt.f32 %v461_v13  ;;  %vm464_vm10 = vcmp.eq.f32.partialorder %v461_v13, inf  ;;  %v467_v22 = vand.u32 2147483648, %v461_v13  ;;  %vm466_vm11 = vcmp.eq.f32.partialorder %v461_v13, 0.0 }
 0x27d   :  { %v661_v14 = vpop.eup %660 }
 0x27e   :  { %v451_v15 = vmul.f32 %v661_v14, %v449_v12 }
 0x280   :  { %v453_v17 = vsel %vm452_vm8, %v449_v12, %v451_v15 }
 0x281   :  { %v663_v18 = vpop.eup %662  ;;  %v456_v19 = vsel %vm454_vm9, %v455_v16, %v453_v17 }
 0x282   :  { %v457_v20 = vadd.f32 1e-06, %v456_v19  ;;  %v463_v21 = vmul.f32 %v663_v18, %v461_v13 }
 0x284   :  { %v465_v23 = vsel %vm464_vm10, %v461_v13, %v463_v21  ;;  %664 = vrcp.f32 %v457_v20 }
 0x285   :  { %v468_v35 = vsel %vm466_vm11, %v467_v22, %v465_v23 }
 0x286   :  { %v469_v24 = vadd.f32 1e-06, %v468_v35 }
 0x288   :  { %666 = vrcp.f32 %v469_v24 }
 0x28e   :  { %v665_v25 = vpop.eup %664 }
 0x28f   :  { %v471_v27 = vmul.f32 %v665_v25, %v318_v62 }
 0x292   :  { %v667_v26 = vpop.eup %666 }
 0x293   :  { %v473_v28 = vmul.f32 %v667_v26, %v444_v2 }
 0x295   :  { %v474_v29 = vadd.f32 %v473_v28, %v471_v27 }
 0x297   :  { %v475_v30 = vmul.f32 0.5, %v474_v29 }
 0x299   :  { %629 = vmatmul.mubr.msk.f32.vlgmr.msra.gmra.mrb[2].mxu0 %vm243_vm6, %v475_v30 }
 0x36c   :  { %v556_v32 = vpop.f32.mrb[2].mxu0 }
 0x36d   :  { %v557_v33 = vadd.f32 %v581_v31, %v556_v32  ;;  %v630_v34 = vpop.f32.mrb[3].mxu0 }
 0x36f   :  { %560 = vst [vmem:[#allocation11] sm:$0x3] %v557_v33 }
 0x370   :  { %789 = shalt.err (!%p786_p2)
}
 0x371   :  { %s790_s20 = scalar_lea.hbm %s1018_s7, 32 }
 0x372   :  { %p791_p3 = scmp.ne.s32.totalorder %s1018_s7, %s790_s20  ;;  %p794_p4 = scmp.lt.u32.totalorder %s790_s20, %s1018_s7 }
 0x374   :  { %p796_p5 = pnand %p794_p4, %p791_p3 }
 0x376   :  { %799 = shalt.err (!%p796_p5)
}
 0x377   :  { %570 = dma.vmem_to_hbm [thread:$0]  %s568_s27, 32, %s1018_s7, [#allocation4]  }
 0x378   :  { %806 = dma.done.wait [#allocation4], 32  }
 0x379   :  { %807 = vsyncadd [#allocation4], 4294967264 }
 0x37a   :  { %574 = vsyncpa [#allocation3], 1 }
 0x37b   :  { %575 = vsyncpa [#allocation6], 1 }
 0x37c   :  { %576 = vsyncpa [#allocation9], 1 }
 0x37d   :  { %577 = vsyncpa [#allocation4], 1 }

</bundles_post_ra>
